<compile_context>
chip_gen: v7x
topology: tpu7x:2x2x1
jax: 0.10.0
libtpu: 0.0.40
codegen_flags: <defaults>
</compile_context>

<pallas_src>
import functools

import jax
import jax.numpy as jnp
import numpy as np
from jax.experimental import pallas as pl
from jax.experimental.pallas import tpu as pltpu


def _pad_kernel(x_ref, o_ref, *, left, right, top, bottom):
    """Replicate-pad a batch of planes.

    x_ref: (B, H, W) VMEM block, o_ref: (B, H_out, W_out) VMEM block.
    """
    B, H, W = x_ref.shape

    # Interior copy (bulk of the bytes).
    o_ref[:, top:top + H, left:left + W] = x_ref[...]

    # Left / right replicated columns.
    if left:
        o_ref[:, top:top + H, 0:left] = jnp.broadcast_to(
            x_ref[:, :, 0:1], (B, H, left))
    if right:
        o_ref[:, top:top + H, left + W:left + W + right] = jnp.broadcast_to(
            x_ref[:, :, W - 1:W], (B, H, right))

    # Top / bottom replicated rows.
    if top:
        o_ref[:, 0:top, left:left + W] = jnp.broadcast_to(
            x_ref[:, 0:1, :], (B, top, W))
    if bottom:
        o_ref[:, top + H:top + H + bottom, left:left + W] = jnp.broadcast_to(
            x_ref[:, H - 1:H, :], (B, bottom, W))

    # Corners (replicate the corner value).
    if top and left:
        o_ref[:, 0:top, 0:left] = jnp.broadcast_to(
            x_ref[:, 0:1, 0:1], (B, top, left))
    if top and right:
        o_ref[:, 0:top, left + W:left + W + right] = jnp.broadcast_to(
            x_ref[:, 0:1, W - 1:W], (B, top, right))
    if bottom and left:
        o_ref[:, top + H:top + H + bottom, 0:left] = jnp.broadcast_to(
            x_ref[:, H - 1:H, 0:1], (B, bottom, left))
    if bottom and right:
        o_ref[:, top + H:top + H + bottom, left + W:left + W + right] = (
            jnp.broadcast_to(x_ref[:, H - 1:H, W - 1:W], (B, bottom, right)))


def _vmem_capacity_bytes():
    """Physical VMEM per core; conservative 64 MiB fallback (v7x-sized)."""
    try:
        info = pltpu.get_tpu_info()
        cap = int(getattr(info, "vmem_capacity_bytes", 0))
        if cap > 0:
            return cap
    except Exception:
        pass
    return 64 << 20


def _vmem_tile_bytes(h, w, itemsize):
    """Bytes a (h, w) plane occupies in VMEM, padded to (8, 128) tiles."""
    return (pl.cdiv(h, 8) * 8) * (pl.cdiv(w, 128) * 128) * itemsize


def symmetric_padding(x, amount):
    """Pallas equivalent of SymmetricPadding(amount)(x) for NCHW input x."""
    if isinstance(amount, int):
        amount = [amount] * 4
    left, right, top, bottom = (int(a) for a in amount)

    N, C, H, W = x.shape
    H_out = H + top + bottom
    W_out = W + left + right
    NC = N * C
    itemsize = jnp.dtype(x.dtype).itemsize

    x_flat = x.reshape(NC, H, W)

    # ---- generation-aware VMEM sizing -----------------------------------
    vmem_cap = _vmem_capacity_bytes()          # 128 MiB v5e/v6e, 64 MiB v7x
    vmem_limit = int(vmem_cap * 0.75)          # raise scoped limit, keep headroom
    budget = int(vmem_cap * 0.50)              # double-buffered in+out working set

    # Double-buffered input + output planes (VMEM tile-padded).
    per_plane = 2 * (_vmem_tile_bytes(H, W, itemsize)
                     + _vmem_tile_bytes(H_out, W_out, itemsize))
    b_fit = max(1, budget // per_plane)
    # Keep >= 2 grid steps so both v7x TensorCores get work and the DMA
    # pipeline has something to overlap with.
    b_cap = max(1, pl.cdiv(NC, 2))
    limit = int(min(b_fit, b_cap, NC))
    # Prefer a B that divides NC (avoids a ragged final block) if one exists
    # in [limit/2, limit]; otherwise use `limit` and let Pallas mask the tail.
    B = limit
    for b in range(limit, max(limit // 2, 0), -1):
        if NC % b == 0:
            B = b
            break
    grid = (pl.cdiv(NC, B),)
    # TODO(synk): add an H-tiled variant for single planes too large for VMEM
    # (per_plane > budget); current fallback is B=1 with a raised vmem limit.

    kernel = functools.partial(
        _pad_kernel, left=left, right=right, top=top, bottom=bottom)

    cost = pl.CostEstimate(
        flops=0,
        transcendentals=0,
        bytes_accessed=(NC * H * W + NC * H_out * W_out) * itemsize)

    out_flat = pl.pallas_call(
        kernel,
        out_shape=jax.ShapeDtypeStruct((NC, H_out, W_out), x.dtype),
        grid_spec=pltpu.PrefetchScalarGridSpec(
            num_scalar_prefetch=0,
            grid=grid,
            in_specs=[pl.BlockSpec((B, H, W), lambda i: (i, 0, 0))],
            out_specs=pl.BlockSpec((B, H_out, W_out), lambda i: (i, 0, 0)),
        ),
        compiler_params=pltpu.CompilerParams(
            dimension_semantics=("parallel",),
            vmem_limit_bytes=vmem_limit,
        ),
        cost_estimate=cost,
    )(x_flat)

    return out_flat.reshape(N, C, H_out, W_out)


if __name__ == "__main__":
    key = jax.random.PRNGKey(0)
    # Small NCHW input, consistent with the module's conv-style usage.
    x = jax.random.normal(key, (2, 4, 16, 16), dtype=jnp.float32)

    # SymmetricPadding(1): pad 1 on each side of H and W (replicate mode).
    y = symmetric_padding(x, 1)
    y = jax.block_until_ready(y)
    ref = jnp.pad(x, ((0, 0), (0, 0), (1, 1), (1, 1)), mode="edge")
    np.testing.assert_allclose(np.asarray(y), np.asarray(ref), rtol=0, atol=0)
    assert y.shape == (2, 4, 18, 18)

    # Asymmetric padding (exercises the zero-pad and >1-pad branches).
    amount = [2, 1, 0, 3]  # (left, right, top, bottom) -- PyTorch F.pad order
    y2 = jax.block_until_ready(symmetric_padding(x, amount))
    ref2 = jnp.pad(x, ((0, 0), (0, 0), (0, 3), (2, 1)), mode="edge")
    np.testing.assert_allclose(np.asarray(y2), np.asarray(ref2), rtol=0, atol=0)
    assert y2.shape == (2, 4, 19, 19)

    print("KERNEL_OK")
</pallas_src>

<mosaic_0001>
module attributes {stable_mosaic.version = 11 : i64} {
  func.func @_pad_kernel(%arg0: i32, %arg1: memref<4x16x16xf32, #tpu.memory_space<vmem>>, %arg2: memref<4x18x18xf32, #tpu.memory_space<vmem>>) attributes {dimension_semantics = [#tpu.dimension_semantics<parallel>], iteration_bounds = array<i64: 2>, scalar_prefetch = 0 : i64, scratch_operands = 0 : i64, tpu.core_type = #tpu.core_type<tc>, window_params = [{transform_indices = @transform_0, window_bounds = array<i64: 4, 16, 16>}, {transform_indices = @transform_1, window_bounds = array<i64: 4, 18, 18>}]} {
    %c0 = arith.constant 0 : index
    %c0_0 = arith.constant 0 : index
    %c0_1 = arith.constant 0 : index
    %0 = vector.load %arg1[%c0, %c0_0, %c0_1] : memref<4x16x16xf32, #tpu.memory_space<vmem>>, vector<4x16x16xf32>
    %c0_2 = arith.constant 0 : index
    %c1 = arith.constant 1 : index
    %c1_3 = arith.constant 1 : index
    %1 = vector.load %arg2[%c0_2, %c1, %c1_3] : memref<4x18x18xf32, #tpu.memory_space<vmem>>, vector<4x16x16xf32>
    tpu.vector_store %arg2[%c0_2, %c1, %c1_3], %0 {strides = array<i32>} : memref<4x18x18xf32, #tpu.memory_space<vmem>>, vector<4x16x16xf32>,
    %c0_4 = arith.constant 0 : index
    %c0_5 = arith.constant 0 : index
    %c0_6 = arith.constant 0 : index
    %2 = vector.load %arg1[%c0_4, %c0_5, %c0_6] : memref<4x16x16xf32, #tpu.memory_space<vmem>>, vector<4x16x1xf32>
    %c0_7 = arith.constant 0 : index
    %c1_8 = arith.constant 1 : index
    %c0_9 = arith.constant 0 : index
    %3 = vector.load %arg2[%c0_7, %c1_8, %c0_9] : memref<4x18x18xf32, #tpu.memory_space<vmem>>, vector<4x16x1xf32>
    tpu.vector_store %arg2[%c0_7, %c1_8, %c0_9], %2 {strides = array<i32>} : memref<4x18x18xf32, #tpu.memory_space<vmem>>, vector<4x16x1xf32>,
    %c0_10 = arith.constant 0 : index
    %c0_11 = arith.constant 0 : index
    %c15 = arith.constant 15 : index
    %4 = vector.load %arg1[%c0_10, %c0_11, %c15] : memref<4x16x16xf32, #tpu.memory_space<vmem>>, vector<4x16x1xf32>
    %c0_12 = arith.constant 0 : index
    %c1_13 = arith.constant 1 : index
    %c17 = arith.constant 17 : index
    %5 = vector.load %arg2[%c0_12, %c1_13, %c17] : memref<4x18x18xf32, #tpu.memory_space<vmem>>, vector<4x16x1xf32>
    tpu.vector_store %arg2[%c0_12, %c1_13, %c17], %4 {strides = array<i32>} : memref<4x18x18xf32, #tpu.memory_space<vmem>>, vector<4x16x1xf32>,
    %c0_14 = arith.constant 0 : index
    %c0_15 = arith.constant 0 : index
    %c0_16 = arith.constant 0 : index
    %6 = vector.load %arg1[%c0_14, %c0_15, %c0_16] : memref<4x16x16xf32, #tpu.memory_space<vmem>>, vector<4x1x16xf32>
    %c0_17 = arith.constant 0 : index
    %c0_18 = arith.constant 0 : index
    %c1_19 = arith.constant 1 : index
    %7 = vector.load %arg2[%c0_17, %c0_18, %c1_19] : memref<4x18x18xf32, #tpu.memory_space<vmem>>, vector<4x1x16xf32>
    tpu.vector_store %arg2[%c0_17, %c0_18, %c1_19], %6 {strides = array<i32>} : memref<4x18x18xf32, #tpu.memory_space<vmem>>, vector<4x1x16xf32>,
    %c0_20 = arith.constant 0 : index
    %c15_21 = arith.constant 15 : index
    %c0_22 = arith.constant 0 : index
    %8 = vector.load %arg1[%c0_20, %c15_21, %c0_22] : memref<4x16x16xf32, #tpu.memory_space<vmem>>, vector<4x1x16xf32>
    %c0_23 = arith.constant 0 : index
    %c17_24 = arith.constant 17 : index
    %c1_25 = arith.constant 1 : index
    %9 = vector.load %arg2[%c0_23, %c17_24, %c1_25] : memref<4x18x18xf32, #tpu.memory_space<vmem>>, vector<4x1x16xf32>
    tpu.vector_store %arg2[%c0_23, %c17_24, %c1_25], %8 {strides = array<i32>} : memref<4x18x18xf32, #tpu.memory_space<vmem>>, vector<4x1x16xf32>,
    %c0_26 = arith.constant 0 : index
    %c0_27 = arith.constant 0 : index
    %c0_28 = arith.constant 0 : index
    %10 = vector.load %arg1[%c0_26, %c0_27, %c0_28] : memref<4x16x16xf32, #tpu.memory_space<vmem>>, vector<4x1x1xf32>
    %c0_29 = arith.constant 0 : index
    %c0_30 = arith.constant 0 : index
    %c0_31 = arith.constant 0 : index
    %11 = vector.load %arg2[%c0_29, %c0_30, %c0_31] : memref<4x18x18xf32, #tpu.memory_space<vmem>>, vector<4x1x1xf32>
    tpu.vector_store %arg2[%c0_29, %c0_30, %c0_31], %10 {strides = array<i32>} : memref<4x18x18xf32, #tpu.memory_space<vmem>>, vector<4x1x1xf32>,
    %c0_32 = arith.constant 0 : index
    %c0_33 = arith.constant 0 : index
    %c15_34 = arith.constant 15 : index
    %12 = vector.load %arg1[%c0_32, %c0_33, %c15_34] : memref<4x16x16xf32, #tpu.memory_space<vmem>>, vector<4x1x1xf32>
    %c0_35 = arith.constant 0 : index
    %c0_36 = arith.constant 0 : index
    %c17_37 = arith.constant 17 : index
    %13 = vector.load %arg2[%c0_35, %c0_36, %c17_37] : memref<4x18x18xf32, #tpu.memory_space<vmem>>, vector<4x1x1xf32>
    tpu.vector_store %arg2[%c0_35, %c0_36, %c17_37], %12 {strides = array<i32>} : memref<4x18x18xf32, #tpu.memory_space<vmem>>, vector<4x1x1xf32>,
    %c0_38 = arith.constant 0 : index
    %c15_39 = arith.constant 15 : index
    %c0_40 = arith.constant 0 : index
    %14 = vector.load %arg1[%c0_38, %c15_39, %c0_40] : memref<4x16x16xf32, #tpu.memory_space<vmem>>, vector<4x1x1xf32>
    %c0_41 = arith.constant 0 : index
    %c17_42 = arith.constant 17 : index
    %c0_43 = arith.constant 0 : index
    %15 = vector.load %arg2[%c0_41, %c17_42, %c0_43] : memref<4x18x18xf32, #tpu.memory_space<vmem>>, vector<4x1x1xf32>
    tpu.vector_store %arg2[%c0_41, %c17_42, %c0_43], %14 {strides = array<i32>} : memref<4x18x18xf32, #tpu.memory_space<vmem>>, vector<4x1x1xf32>,
    %c0_44 = arith.constant 0 : index
    %c15_45 = arith.constant 15 : index
    %c15_46 = arith.constant 15 : index
    %16 = vector.load %arg1[%c0_44, %c15_45, %c15_46] : memref<4x16x16xf32, #tpu.memory_space<vmem>>, vector<4x1x1xf32>
    %c0_47 = arith.constant 0 : index
    %c17_48 = arith.constant 17 : index
    %c17_49 = arith.constant 17 : index
    %17 = vector.load %arg2[%c0_47, %c17_48, %c17_49] : memref<4x18x18xf32, #tpu.memory_space<vmem>>, vector<4x1x1xf32>
    tpu.vector_store %arg2[%c0_47, %c17_48, %c17_49], %16 {strides = array<i32>} : memref<4x18x18xf32, #tpu.memory_space<vmem>>, vector<4x1x1xf32>,
    return
  }
  func.func @transform_0(%arg0: i32) -> (i32, i32, i32) {
    %c0_i32 = arith.constant 0 : i32
    %c0_i32_0 = arith.constant 0 : i32
    %c0_i32_1 = arith.constant 0 : i32
    return %arg0, %c0_i32, %c0_i32_0 : i32, i32, i32
  }
  func.func @transform_1(%arg0: i32) -> (i32, i32, i32) {
    %c0_i32 = arith.constant 0 : i32
    %c0_i32_0 = arith.constant 0 : i32
    %c0_i32_1 = arith.constant 0 : i32
    return %arg0, %c0_i32, %c0_i32_0 : i32, i32, i32
  }
}

</mosaic_0001>

<bundles_post_ra>
// kernel: tpu_custom_call.1
= control target key start
LH: loop header
LB: loop body
LE: loop exit
PB: predicated region body
PF: predicated region fallthrough
CT: control target
= control target key end

     0   :  { %6 = vsyncpa [#allocation3], 0  ;;  %s861_s0 = inlined_call_operand.hbm [shape: f32[8,16,16], index: 0, kind: input, shape index: {}]   ;;  %s862_s1 = inlined_call_operand.vmem [shape: f32[8,18,18], index: 1, kind: output, shape index: {}]  }
   0x1   :  { %8 = vsyncpa [#allocation3 + $0x1], 0  ;;  %s582_s6 = smov 0   ;;  %s584_s7 = smov 0  }
   0x2   :  { %s586_s8 = smov 0   ;;  %s588_s9 = smov 0  }
   0x3 LB: > { %s441_s10 = sadd.s32 4294967295, %s565_s9   ;;  %s602_s11 = sadd.s32 1, %s565_s9   ;;  %s565_s9 = sphi %s588_s9, %s869_s9   ;;  %s561_s8 = sphi %s586_s8, %s868_s8   ;;  %s557_s7 = sphi %s584_s7, %s867_s7   ;;  %s553_s6 = sphi %s582_s6, %s866_s6  }
   0x4   : > { %s18_s12 = ssub.s32 %s565_s9, %s602_s11  ;;  %s21_s13 = sadd.s32 1, %s561_s8 }
   0x5   : > { %p19_p0 = scmp.eq.s32.totalorder %s18_s12, 0  ;;  %p28_p1 = scmp.ne.s32.totalorder %s561_s8, %s557_s7 }
   0x6   : > { %p29_p2 = scmp.eq.s32.totalorder %s565_s9, 0  ;;  %p34_p3 = scmp.ne.s32.totalorder %s557_s7, %s553_s6 }
   0x7   : > { %s612_s14 = scalar_select %p19_p0, %s561_s8, %s21_s13  }
   0x8   : > { %p30_p4 = por %p29_p2, %p28_p1  ;;  %p35_p5 = scmp.eq.s32.totalorder %s441_s10, 0 }
   0x9   : > { %p464_p6 = scmp.lt.s32.totalorder %s565_s9, 2  ;;  %s84_s16 = sand.u32 1, %s561_s8  }
   0xa   : > { %p617_p7 = por %p35_p5, %p34_p3  ;;  %s445_s17 = sshll.u32 %s84_s16, 6 }
   0xb   : > { %s456_s18 = sshll.u32 %s565_s9, 10  ;;  %s88_s22 = scalar_lea.vmem [#allocation2], %s445_s17 }
   0xc   : > { %s626_s21 = scalar_lea.hbm %s861_s0, %s456_s18  ;;  %s96_s23 = sshll.u32 %s88_s22, 4  ;;  %s628_s23 = int_to_ptr.vmem [resolvable:$true] %s96_s23 }
   0xd   : > { %p630_p8 = pnand %p464_p6, %p30_p4  ;;  %s635_s25 = scalar_lea.sflag [#allocation3], %s84_s16 }
   0xe   : > { %s501_s26 = scalar_lea.hbm %s626_s21, 1024  ;;  %s506_s29 = scalar_lea.hbm %s861_s0, 2048 }
   0xf   : > { %p502_p10 = scmp.ne.s32.totalorder %s626_s21, %s501_s26  ;;  %p503_p11 = pneg %p630_p8 }
  0x10   : > { %p507_p0 = scmp.lt.u32.totalorder %s626_s21, %s861_s0  ;;  %p508_p1 = scmp.lt.u32.totalorder %s506_s29, %s501_s26 }
  0x11   : > { %p504_p12 = pnand %p503_p11, %p502_p10  ;;  %p510_p3 = scmp.lt.u32.totalorder %s501_s26, %s626_s21 }
  0x12   : > { %p509_p2 = por %p508_p1, %p507_p0 }
  0x13   : > { %p505_p13 = pneg %p504_p12 }
  0x14   : > { %p511_p4 = por %p510_p3, %p509_p2 }
  0x16   : > { %p512_p5 = pnand %p511_p4, %p505_p13 }
  0x18   : > { %515 = shalt.err (!%p512_p5)
}
  0x19   : > { %s516_s3 = scalar_lea.vmem %s628_s23, 1024  ;;  %s567_s4 = smov [#allocation2]  }
  0x1a   : > { %p517_p6 = scmp.ne.s32.totalorder %s628_s23, %s516_s3  ;;  %s521_s5 = sshll.u32 %s567_s4, 4  ;;  %s522_s5 = int_to_ptr.vmem [resolvable:$false] %s521_s5 }
  0x1b   : > { %s523_s6 = scalar_lea.vmem %s522_s5, 2048  ;;  %p524_p9 = scmp.lt.s32.totalorder %s628_s23, %s522_s5 }
  0x1c   : > { %p519_p10 = pnand %p517_p6, %p503_p11  ;;  %p525_p0 = scmp.lt.s32.totalorder %s523_s6, %s516_s3 }
  0x1e   : > { %p520_p12 = pneg %p519_p10  ;;  %p526_p1 = por %p525_p0, %p524_p9 }
  0x20   : > { %p527_p2 = pnand %p526_p1, %p520_p12 }
  0x22   : > { %530 = shalt.err (!%p527_p2)
}
  0x23   : > { %s568_s12 = smov 128   ;;  %s569_s13 = smov 8  }
  0x24   : > { %463 = dma.hbm_to_vmem [thread:$0]  (!%p630_p8), %s626_s21, 1024, %s628_s23, %s635_s25, %s568_s12, %s568_s12, %s569_s13  }
  0x25   : > { %p104_p11 = scmp.lt.s32.totalorder %s565_s9, 3  ;;  %p865_p13 = scmp.ge.s32.totalorder %s565_s9, 1 }
  0x27   : > { %p105_p3 = pnand %p865_p13, %p104_p11 }
  0x28   : > { %s110_s16 = sand.u32 (!%p105_p3), 1, %s557_s7  }
  0x29   : > { %108 = sbr.rel (%p105_p3) target bundleno = 227 (0xe3), region = 24  ;;  %s450_s17 = sshll.u32 (!%p105_p3), %s110_s16, 6 }
  0x2a   : > { %s111_s18 = scalar_lea.sflag (!%p105_p3), [#allocation3], %s110_s16  ;;  %s667_s19 = scalar_lea.vmem (!%p105_p3), [#allocation2], %s450_s17 }
  0x30   : > { %548 = dma.done.wait (%p617_p7), %s111_s18, 1024  }
  0x31   : > { %550 = vsyncadd (%p617_p7), %s111_s18, 4294966272  ;;  %v257_v0 = vld [vmem:[%s667_s19] sm:$0x1]  ;;  %s570_s20 = smov 1   ;;  %v282_v2 = vld [vmem:[%s667_s19 + $0xf] sm:$0x1] }
  0x32   : > { %v675_v1 = vld [vmem:[%s667_s19] sm:$0xff]  ;;  %265 = vrot.lane.b32.xlu1 %v257_v0, %s570_s20  ;;  %v680_v3 = vld [vmem:[%s667_s19 + $0x8] sm:$0xff]  ;;  %v684_v4 = vld [vmem:[%s667_s19 + $0x18] sm:$0xff]  ;;  %s571_s15 = smov 2   ;;  %s451_s21 = sshll.u32 %s441_s10, 2  ;;  %vm277_vm0 = vcmask 131080  }
  0x33   : > { %158 = vrot.lane.b32.xlu0 %v675_v1, %s570_s20  ;;  %v687_v5 = vld [vmem:[%s667_s19 + $0x10] sm:$0xff]  ;;  %v283_v6 = vld [vmem:[%s667_s19 + $0x1f] sm:$0x1]  ;;  %v694_v8 = vld [vmem:[%s667_s19 + $0x28] sm:$0xff]  ;;  %p136_p7 = scmp.lt.s32.totalorder %s451_s21, 7  ;;  %vm182_vm1 = vcmask 138248  }
  0x34   : > { %v258_v7 = vld [vmem:[%s667_s19 + $0x10] sm:$0x1]  ;;  %v697_v9 = vld [vmem:[%s667_s19 + $0x20] sm:$0xff]  ;;  %v284_v10 = vld [vmem:[%s667_s19 + $0x2f] sm:$0x1]  ;;  %vm199_vm2 = vcmask 7168  }
  0x35   : > { %v259_v11 = vld [vmem:[%s667_s19 + $0x20] sm:$0x1]  ;;  %v704_v12 = vld [vmem:[%s667_s19 + $0x38] sm:$0xff]  ;;  %v707_v13 = vld [vmem:[%s667_s19 + $0x30] sm:$0xff]  ;;  %s871_s21 = smov (!%p136_p7, %s451_s21), 7  ;;  %vm310_vm3 = vcmask 0  }
  0x36   : > { %290 = vrot.lane.b32.xlu1 %v282_v2, %s570_s20  ;;  %v285_v14 = vld [vmem:[%s667_s19 + $0x3f] sm:$0x1]  ;;  %v260_v15 = vld [vmem:[%s667_s19 + $0x30] sm:$0x1]  ;;  %v348_v16 = vld [vmem:[%s667_s19 + $0xf] sm:$0x1] }
  0x37   : > { %160 = vrot.lane.b32.xlu0 %v680_v3, %s570_s20  ;;  %v315_v17 = vld [vmem:[%s667_s19] sm:$0x1]  ;;  %v349_v18 = vld [vmem:[%s667_s19 + $0x1f] sm:$0x1]  ;;  %v316_v19 = vld [vmem:[%s667_s19 + $0x10] sm:$0x1] }
  0x38   : > { %v350_v20 = vld [vmem:[%s667_s19 + $0x2f] sm:$0x1]  ;;  %v317_v21 = vld [vmem:[%s667_s19 + $0x20] sm:$0x1]  ;;  %v351_v22 = vld [vmem:[%s667_s19 + $0x3f] sm:$0x1] }
  0x39   : > { %v318_v23 = vld [vmem:[%s667_s19 + $0x30] sm:$0x1]  ;;  %s457_s22 = smul.u32 24, %s871_s21  ;;  %v340_v38 = vld [vmem:[%s667_s19 + $0xf] sm:$0x1]  ;;  %vm248_vm4 = vcmask 146568  }
  0x3a   : > { %164 = vrot.lane.b32.xlu1 %v684_v4, %s570_s20  ;;  %v306_v39 = vld [vmem:[%s667_s19] sm:$0x1]  ;;  %v341_v40 = vld [vmem:[%s667_s19 + $0x1f] sm:$0x1]  ;;  %v307_v42 = vld [vmem:[%s667_s19 + $0x10] sm:$0x1] }
  0x3b   : > { %162 = vrot.lane.b32.xlu0 %v687_v5, %s570_s20  ;;  %s734_s25 = scalar_lea.vmem %s862_s1, %s457_s22  ;;  %v342_v44 = vld [vmem:[%s667_s19 + $0x2f] sm:$0x1]  ;;  %v308_v45 = vld [vmem:[%s667_s19 + $0x20] sm:$0x1]  ;;  %v343_v46 = vld [vmem:[%s667_s19 + $0x3f] sm:$0x1] }
  0x3c   : > { %v309_v47 = vld [vmem:[%s667_s19 + $0x30] sm:$0x1]  ;;  %vm335_vm5 = vcmask 139400  }
  0x3e   : > { %292 = vrot.lane.b32.xlu1 %v283_v6, %s570_s20 }
  0x3f   : > { %267 = vrot.lane.b32.xlu0 %v258_v7, %s570_s20 }
  0x42   : > { %168 = vrot.lane.b32.xlu1 %v694_v8, %s570_s20 }
  0x43   : > { %166 = vrot.lane.b32.xlu0 %v697_v9, %s570_s20 }
  0x46   : > { %294 = vrot.lane.b32.xlu1 %v284_v10, %s570_s20 }
  0x47   : > { %269 = vrot.lane.b32.xlu0 %v259_v11, %s570_s20 }
  0x4a   : > { %172 = vrot.lane.b32.xlu1 %v704_v12, %s570_s20 }
  0x4b   : > { %170 = vrot.lane.b32.xlu0 %v707_v13, %s570_s20 }
  0x4e   : > { %296 = vrot.lane.b32.xlu1 %v285_v14, %s570_s20 }
  0x4f   : > { %271 = vrot.lane.b32.xlu0 %v260_v15, %s570_s20 }
  0x52   : > { %226 = vrot.lane.b32.xlu1 %v680_v3, %s571_s15 }
  0x53   : > { %224 = vrot.lane.b32.xlu0 %v675_v1, %s571_s15 }
  0x56   : > { %356 = vrot.lane.b32.xlu1 %v348_v16, %s571_s15 }
  0x57   : > { %323 = vrot.lane.b32.xlu0 %v315_v17, %s571_s15 }
  0x5a   : > { %230 = vrot.lane.b32.xlu1 %v684_v4, %s571_s15 }
  0x5b   : > { %228 = vrot.lane.b32.xlu0 %v687_v5, %s571_s15 }
  0x5e   : > { %358 = vrot.lane.b32.xlu1 %v349_v18, %s571_s15 }
  0x5f   : > { %325 = vrot.lane.b32.xlu0 %v316_v19, %s571_s15 }
  0x62   : > { %234 = vrot.lane.b32.xlu1 %v694_v8, %s571_s15 }
  0x63   : > { %232 = vrot.lane.b32.xlu0 %v697_v9, %s571_s15 }
  0x66   : > { %360 = vrot.lane.b32.xlu1 %v350_v20, %s571_s15 }
  0x67   : > { %327 = vrot.lane.b32.xlu0 %v317_v21, %s571_s15 }
  0x6a   : > { %238 = vrot.lane.b32.xlu1 %v704_v12, %s571_s15 }
  0x6b   : > { %236 = vrot.lane.b32.xlu0 %v707_v13, %s571_s15 }
  0x6e   : > { %362 = vrot.lane.b32.xlu1 %v351_v22, %s571_s15 }
  0x6f   : > { %329 = vrot.lane.b32.xlu0 %v318_v23, %s571_s15 }
  0xa4   : > { %v266_v24 = vpop.permute.xlu1 %265 }
  0xa5   : > { %v159_v25 = vpop.permute.xlu0 %158  ;;  %278 = vst.msk [vmem:[%s734_s25] sm:$0x1] %vm277_vm0, %v266_v24 }
  0xa6   : > { %183 = vst.msk [vmem:[%s734_s25 + $0x1] sm:$0xff] %vm182_vm1, %v159_v25 }
  0xa7   : > { %200 = vst.msk [vmem:[%s734_s25 + $0x1] sm:$0xff] %vm199_vm2, %v675_v1 }
  0xa8   : > { %v291_v26 = vpop.permute.xlu1 %290  ;;  %311 = vst.msk [vmem:[%s734_s25] sm:$0x1] %vm310_vm3, %v306_v39 }
  0xa9   : > { %v161_v27 = vpop.permute.xlu0 %160  ;;  %302 = vst.msk [vmem:[%s734_s25 + $0x11] sm:$0x1] %vm277_vm0, %v291_v26 }
  0xaa   : > { %184 = vst.msk [vmem:[%s734_s25 + $0x9] sm:$0xff] %vm182_vm1, %v161_v27 }
  0xab   : > { %201 = vst.msk [vmem:[%s734_s25 + $0x9] sm:$0xff] %vm199_vm2, %v680_v3 }
  0xac   : > { %v165_v28 = vpop.permute.xlu1 %164  ;;  %344 = vst.msk [vmem:[%s734_s25 + $0x11] sm:$0x1] %vm310_vm3, %v340_v38 }
  0xad   : > { %v163_v29 = vpop.permute.xlu0 %162  ;;  %186 = vst.msk [vmem:[%s734_s25 + $0x21] sm:$0xff] %vm182_vm1, %v165_v28 }
  0xae   : > { %185 = vst.msk [vmem:[%s734_s25 + $0x19] sm:$0xff] %vm182_vm1, %v163_v29 }
  0xaf   : > { %203 = vst.msk [vmem:[%s734_s25 + $0x21] sm:$0xff] %vm199_vm2, %v684_v4  ;;  %202 = vst.msk [vmem:[%s734_s25 + $0x19] sm:$0xff] %vm199_vm2, %v687_v5 }
  0xb0   : > { %v293_v30 = vpop.permute.xlu1 %292 }
  0xb1   : > { %v268_v31 = vpop.permute.xlu0 %267  ;;  %303 = vst.msk [vmem:[%s734_s25 + $0x29] sm:$0x1] %vm277_vm0, %v293_v30 }
  0xb2   : > { %279 = vst.msk [vmem:[%s734_s25 + $0x18] sm:$0x1] %vm277_vm0, %v268_v31 }
  0xb3   : > { %345 = vst.msk [vmem:[%s734_s25 + $0x29] sm:$0x1] %vm310_vm3, %v341_v40  ;;  %312 = vst.msk [vmem:[%s734_s25 + $0x18] sm:$0x1] %vm310_vm3, %v307_v42 }
  0xb4   : > { %v169_v32 = vpop.permute.xlu1 %168 }
  0xb5   : > { %v167_v33 = vpop.permute.xlu0 %166  ;;  %188 = vst.msk [vmem:[%s734_s25 + $0x39] sm:$0xff] %vm182_vm1, %v169_v32 }
  0xb6   : > { %187 = vst.msk [vmem:[%s734_s25 + $0x31] sm:$0xff] %vm182_vm1, %v167_v33 }
  0xb7   : > { %205 = vst.msk [vmem:[%s734_s25 + $0x39] sm:$0xff] %vm199_vm2, %v694_v8  ;;  %204 = vst.msk [vmem:[%s734_s25 + $0x31] sm:$0xff] %vm199_vm2, %v697_v9 }
  0xb8   : > { %v295_v34 = vpop.permute.xlu1 %294 }
  0xb9   : > { %v270_v35 = vpop.permute.xlu0 %269  ;;  %304 = vst.msk [vmem:[%s734_s25 + $0x41] sm:$0x1] %vm277_vm0, %v295_v34 }
  0xba   : > { %280 = vst.msk [vmem:[%s734_s25 + $0x30] sm:$0x1] %vm277_vm0, %v270_v35 }
  0xbb   : > { %346 = vst.msk [vmem:[%s734_s25 + $0x41] sm:$0x1] %vm310_vm3, %v342_v44  ;;  %313 = vst.msk [vmem:[%s734_s25 + $0x30] sm:$0x1] %vm310_vm3, %v308_v45 }
  0xbc   : > { %v173_v36 = vpop.permute.xlu1 %172 }
  0xbd   : > { %v171_v37 = vpop.permute.xlu0 %170  ;;  %190 = vst.msk [vmem:[%s734_s25 + $0x51] sm:$0xff] %vm182_vm1, %v173_v36 }
  0xbe   : > { %189 = vst.msk [vmem:[%s734_s25 + $0x49] sm:$0xff] %vm182_vm1, %v171_v37 }
  0xbf   : > { %207 = vst.msk [vmem:[%s734_s25 + $0x51] sm:$0xff] %vm199_vm2, %v704_v12  ;;  %206 = vst.msk [vmem:[%s734_s25 + $0x49] sm:$0xff] %vm199_vm2, %v707_v13 }
  0xc0   : > { %v297_v41 = vpop.permute.xlu1 %296 }
  0xc1   : > { %v272_v43 = vpop.permute.xlu0 %271  ;;  %305 = vst.msk [vmem:[%s734_s25 + $0x59] sm:$0x1] %vm277_vm0, %v297_v41 }
  0xc2   : > { %281 = vst.msk [vmem:[%s734_s25 + $0x48] sm:$0x1] %vm277_vm0, %v272_v43 }
  0xc3   : > { %347 = vst.msk [vmem:[%s734_s25 + $0x59] sm:$0x1] %vm310_vm3, %v343_v46  ;;  %314 = vst.msk [vmem:[%s734_s25 + $0x48] sm:$0x1] %vm310_vm3, %v309_v47 }
  0xc4   : > { %v227_v48 = vpop.permute.xlu1 %226 }
  0xc5   : > { %v225_v49 = vpop.permute.xlu0 %224  ;;  %250 = vst.msk [vmem:[%s734_s25 + $0x9] sm:$0xff] %vm248_vm4, %v227_v48 }
  0xc6   : > { %249 = vst.msk [vmem:[%s734_s25 + $0x1] sm:$0xff] %vm248_vm4, %v225_v49 }
  0xc8   : > { %v357_v50 = vpop.permute.xlu1 %356 }
  0xc9   : > { %v324_v51 = vpop.permute.xlu0 %323  ;;  %368 = vst.msk [vmem:[%s734_s25 + $0x11] sm:$0x1] %vm335_vm5, %v357_v50 }
  0xca   : > { %336 = vst.msk [vmem:[%s734_s25] sm:$0x1] %vm335_vm5, %v324_v51 }
  0xcc   : > { %v231_v52 = vpop.permute.xlu1 %230 }
  0xcd   : > { %v229_v53 = vpop.permute.xlu0 %228  ;;  %252 = vst.msk [vmem:[%s734_s25 + $0x21] sm:$0xff] %vm248_vm4, %v231_v52 }
  0xce   : > { %251 = vst.msk [vmem:[%s734_s25 + $0x19] sm:$0xff] %vm248_vm4, %v229_v53 }
  0xd0   : > { %v359_v54 = vpop.permute.xlu1 %358 }
  0xd1   : > { %v326_v55 = vpop.permute.xlu0 %325  ;;  %369 = vst.msk [vmem:[%s734_s25 + $0x29] sm:$0x1] %vm335_vm5, %v359_v54 }
  0xd2   : > { %337 = vst.msk [vmem:[%s734_s25 + $0x18] sm:$0x1] %vm335_vm5, %v326_v55 }
  0xd4   : > { %v235_v56 = vpop.permute.xlu1 %234 }
  0xd5   : > { %v233_v57 = vpop.permute.xlu0 %232  ;;  %254 = vst.msk [vmem:[%s734_s25 + $0x39] sm:$0xff] %vm248_vm4, %v235_v56 }
  0xd6   : > { %253 = vst.msk [vmem:[%s734_s25 + $0x31] sm:$0xff] %vm248_vm4, %v233_v57 }
  0xd8   : > { %v361_v58 = vpop.permute.xlu1 %360 }
  0xd9   : > { %v328_v59 = vpop.permute.xlu0 %327  ;;  %370 = vst.msk [vmem:[%s734_s25 + $0x41] sm:$0x1] %vm335_vm5, %v361_v58 }
  0xda   : > { %338 = vst.msk [vmem:[%s734_s25 + $0x30] sm:$0x1] %vm335_vm5, %v328_v59 }
  0xdc   : > { %v239_v60 = vpop.permute.xlu1 %238 }
  0xdd   : > { %v237_v61 = vpop.permute.xlu0 %236  ;;  %256 = vst.msk [vmem:[%s734_s25 + $0x51] sm:$0xff] %vm248_vm4, %v239_v60 }
  0xde   : > { %255 = vst.msk [vmem:[%s734_s25 + $0x49] sm:$0xff] %vm248_vm4, %v237_v61 }
  0xe0   : > { %v363_v62 = vpop.permute.xlu1 %362 }
  0xe1   : > { %v330_v63 = vpop.permute.xlu0 %329  ;;  %371 = vst.msk [vmem:[%s734_s25 + $0x59] sm:$0x1] %vm335_vm5, %v363_v62 }
  0xe2   : > { %339 = vst.msk [vmem:[%s734_s25 + $0x48] sm:$0x1] %vm335_vm5, %v330_v63 }
  0xe3 PF: > { %p11_p8 = scmp.ge.s32.totalorder %s602_s11, 4   ;;  %s866_s6 = smov %s557_s7 }
  0xe4   : > { %s867_s7 = smov %s561_s8  ;;  %s868_s8 = smov %s612_s14 }
  0xe5   : > { %s869_s9 = smov %s602_s11  ;;  %13 = sbr.rel (!%p11_p8) target bundleno = 3 (0x3), region = 64 }
  0xec   :  { %396 = vsyncpa [#allocation3], 1 }
  0xed   :  { %398 = vsyncpa [#allocation3 + $0x1], 1 }

</bundles_post_ra>
